<compile_context>
chip_gen: v5e
topology: v5e:2x2
jax: 0.10.0
libtpu: 0.0.40
codegen_flags: <defaults>
</compile_context>

<pallas_src>
from functools import partial

import jax
import jax.numpy as jnp
from jax.experimental import pallas as pl
from jax.experimental.pallas import tpu as pltpu

HIDDEN_PAD = 128  # hidden width 64 padded to a full 128-lane tile


def _round_up(n, m):
    return ((n + m - 1) // m) * m


def _critic_kernel(x_ref, a_ref, w_ref, b_ref, o_ref, *, sxp, sap):
    """One batch tile of the full 3-layer MLP.

    x_ref: (TB, sxp)          f32   state, feature dim zero-padded to mult of 8
    a_ref: (TB, sap)          f32   action, feature dim zero-padded to mult of 8
    w_ref: (3, 128, 128)      f32   padded W1 / W2 / W3 (W1 rows: [0:sxp) = x
                                    part, [sxp:sxp+sap) = a part)
    b_ref: (3, 128)           f32   padded b1 / b2 / b3
    o_ref: (TB, 1)            f32   Q(x, a)
    """
    # f1: relu(x @ W1x + a @ W1a + b1)  -- two small-K MXU dots, f32 accumulate
    h = jnp.dot(x_ref[...], w_ref[0, :sxp, :],
                preferred_element_type=jnp.float32)
    h = h + jnp.dot(a_ref[...], w_ref[0, sxp:sxp + sap, :],
                    preferred_element_type=jnp.float32)
    h = jnp.maximum(h + b_ref[0:1, :], 0.0)

    # f2: relu(h1 @ W2 + b2)
    h = jnp.dot(h, w_ref[1], preferred_element_type=jnp.float32)
    h = jnp.maximum(h + b_ref[1:2, :], 0.0)

    # f3: h2 @ W3 + b3  -- only lane 0 is real; store just that column.
    q = jnp.dot(h, w_ref[2], preferred_element_type=jnp.float32)
    o_ref[...] = (q + b_ref[2:3, :])[:, 0:1]


def critic_forward(x, a, packed_params, *, block_b=2048):
    """Pallas-backed Critic.forward(x, a) -> (B, 1) float32."""
    w_packed, b_packed = packed_params
    B, sx = x.shape
    _, sa = a.shape
    sxp = _round_up(sx, 8)
    sap = _round_up(sa, 8)
    assert sxp + sap <= HIDDEN_PAD, "state_dim + action_dim too large for packing"

    # Cheap wrapper prep: only pad feature dims to a multiple of 8 lanes (f32).
    xf = x.astype(jnp.float32)
    af = a.astype(jnp.float32)
    if sxp != sx:
        xf = jnp.pad(xf, ((0, 0), (0, sxp - sx)))
    if sap != sa:
        af = jnp.pad(af, ((0, 0), (0, sap - sa)))

    # Batch tile: big tiles to amortize per-step overhead, but keep >= 4 grid
    # steps when B is large so the "parallel" axis shards across both v7x TCs.
    if B <= block_b:
        tb = _round_up(B, 8)
    else:
        tb = min(block_b, _round_up((B + 3) // 4, 8))
    b_pad = _round_up(B, tb)
    if b_pad != B:
        xf = jnp.pad(xf, ((0, b_pad - B), (0, 0)))
        af = jnp.pad(af, ((0, b_pad - B), (0, 0)))
    grid = (b_pad // tb,)

    flops = 2 * b_pad * (sxp * HIDDEN_PAD + sap * HIDDEN_PAD
                         + 2 * HIDDEN_PAD * HIDDEN_PAD)
    bytes_accessed = (b_pad * (sxp + sap + 1) * 4
                      + w_packed.size * 4 + b_packed.size * 4)

    out = pl.pallas_call(
        partial(_critic_kernel, sxp=sxp, sap=sap),
        out_shape=jax.ShapeDtypeStruct((b_pad, 1), jnp.float32),
        grid_spec=pltpu.PrefetchScalarGridSpec(
            num_scalar_prefetch=0,
            grid=grid,
            in_specs=[
                pl.BlockSpec((tb, sxp), lambda i: (i, 0)),
                pl.BlockSpec((tb, sap), lambda i: (i, 0)),
                # constant index_maps -> weights/biases DMA'd once, reused
                pl.BlockSpec((3, HIDDEN_PAD, HIDDEN_PAD), lambda i: (0, 0, 0)),
                pl.BlockSpec((3, HIDDEN_PAD), lambda i: (0, 0)),
            ],
            out_specs=pl.BlockSpec((tb, 1), lambda i: (i, 0)),
        ),
        compiler_params=pltpu.CompilerParams(
            dimension_semantics=("parallel",)),
        cost_estimate=pl.CostEstimate(
            flops=int(flops),
            transcendentals=0,
            bytes_accessed=int(bytes_accessed)),
    )(xf, af, w_packed, b_packed)

    return out[:B]


def init_critic_master(key, state_dim, action_dim):
    """fp32 master params matching nn.Linear's U(-1/sqrt(fan_in)) init."""
    def linear(key, fan_in, fan_out):
        kw, kb = jax.random.split(key)
        bound = 1.0 / jnp.sqrt(fan_in)
        w = jax.random.uniform(kw, (fan_in, fan_out), jnp.float32, -bound, bound)
        b = jax.random.uniform(kb, (fan_out,), jnp.float32, -bound, bound)
        return w, b

    k1, k2, k3 = jax.random.split(key, 3)
    w1, b1 = linear(k1, state_dim + action_dim, 64)
    w2, b2 = linear(k2, 64, 64)
    w3, b3 = linear(k3, 64, 1)
    return (w1, b1, w2, b2, w3, b3)


def pack_critic_params(master, state_dim, action_dim):
    """Pack fp32 master params into (3,128,128) f32 weights + (3,128) f32 biases.

    W1 is split: rows [0:sxp) carry the state part, rows [sxp:sxp+sap) the
    action part, so the kernel never needs an in-kernel concat.
    """
    w1, b1, w2, b2, w3, b3 = master
    sxp = _round_up(state_dim, 8)
    sap = _round_up(action_dim, 8)
    assert sxp + sap <= HIDDEN_PAD

    w = jnp.zeros((3, HIDDEN_PAD, HIDDEN_PAD), jnp.float32)
    w = w.at[0, :state_dim, :64].set(w1[:state_dim])
    w = w.at[0, sxp:sxp + action_dim, :64].set(w1[state_dim:])
    w = w.at[1, :64, :64].set(w2)
    w = w.at[2, :64, :1].set(w3)

    b = jnp.zeros((3, HIDDEN_PAD), jnp.float32)
    b = b.at[0, :64].set(b1)
    b = b.at[1, :64].set(b2)
    b = b.at[2, 0].set(b3[0])
    return (w, b)


def critic_ref(x, a, master):
    """Pure-JAX fp32 reference (mirrors the PyTorch module exactly)."""
    w1, b1, w2, b2, w3, b3 = master
    xa = jnp.concatenate([x, a], axis=1)
    h = jnp.maximum(xa @ w1 + b1, 0.0)
    h = jnp.maximum(h @ w2 + b2, 0.0)
    return h @ w3 + b3


if __name__ == "__main__":
    state_dim, action_dim = 8, 2

    key = jax.random.PRNGKey(0)
    kp, kx, ka, kx2, ka2 = jax.random.split(key, 5)

    master = init_critic_master(kp, state_dim, action_dim)
    packed = pack_critic_params(master, state_dim, action_dim)

    # --- small demo batch (single grid step) -------------------------------
    B = 8
    x = jax.random.normal(kx, (B, state_dim), jnp.float32)
    a = jax.random.normal(ka, (B, action_dim), jnp.float32)

    q = critic_forward(x, a, packed)
    jax.block_until_ready(q)
    q_ref = critic_ref(x, a, master)
    assert q.shape == (B, 1)
    assert jnp.allclose(q, q_ref, atol=1e-2, rtol=1e-2)

    # --- larger batch exercising the multi-tile grid + batch padding path --
    B2 = 1000  # block_b=256 -> tb=256, pads to 1024 rows = 4 parallel tiles
    x2 = jax.random.normal(kx2, (B2, state_dim), jnp.float32)
    a2 = jax.random.normal(ka2, (B2, action_dim), jnp.float32)

    q2 = critic_forward(x2, a2, packed, block_b=256)
    jax.block_until_ready(q2)
    q2_ref = critic_ref(x2, a2, master)
    assert q2.shape == (B2, 1)
    assert jnp.allclose(q2, q2_ref, atol=1e-2, rtol=1e-2)

    print("KERNEL_OK")
</pallas_src>

<mosaic_0001>
module attributes {stable_mosaic.version = 11 : i64} {
  func.func @_critic_kernel(%arg0: i32, %arg1: memref<8x8xf32, #tpu.memory_space<vmem>>, %arg2: memref<8x8xf32, #tpu.memory_space<vmem>>, %arg3: memref<3x128x128xf32, #tpu.memory_space<vmem>>, %arg4: memref<3x128xf32, #tpu.memory_space<vmem>>, %arg5: memref<8x1xf32, #tpu.memory_space<vmem>>) attributes {dimension_semantics = [#tpu.dimension_semantics<parallel>], iteration_bounds = array<i64: 1>, scalar_prefetch = 0 : i64, scratch_operands = 0 : i64, tpu.core_type = #tpu.core_type<tc>, window_params = [{transform_indices = @transform_0, window_bounds = array<i64: 8, 8>}, {transform_indices = @transform_1, window_bounds = array<i64: 8, 8>}, {pipeline_mode = #tpu.pipeline_mode<synchronous>, transform_indices = @transform_2, window_bounds = array<i64: 3, 128, 128>}, {pipeline_mode = #tpu.pipeline_mode<synchronous>, transform_indices = @transform_3, window_bounds = array<i64: 3, 128>}, {transform_indices = @transform_4, window_bounds = array<i64: 8, 1>}]} {
    %c0 = arith.constant 0 : index
    %c0_0 = arith.constant 0 : index
    %0 = vector.load %arg1[%c0, %c0_0] : memref<8x8xf32, #tpu.memory_space<vmem>>, vector<8x8xf32>
    %c0_1 = arith.constant 0 : index
    %c0_2 = arith.constant 0 : index
    %c0_3 = arith.constant 0 : index
    %1 = vector.load %arg3[%c0_1, %c0_2, %c0_3] : memref<3x128x128xf32, #tpu.memory_space<vmem>>, vector<1x8x128xf32>
    %2 = vector.shape_cast %1 : vector<1x8x128xf32> to vector<8x128xf32>
    %cst = arith.constant dense<0.000000e+00> : vector<8x128xf32>
    %3 = tpu.matmul %0, %2, %cst {dimension_numbers = #tpu.dot_dimension_numbers<[1], [0], [0], [1], [0, 0, 1, 1], [], []>} : vector<8x8xf32>, vector<8x128xf32>, vector<8x128xf32> -> vector<8x128xf32>
    %c0_4 = arith.constant 0 : index
    %c0_5 = arith.constant 0 : index
    %4 = vector.load %arg2[%c0_4, %c0_5] : memref<8x8xf32, #tpu.memory_space<vmem>>, vector<8x8xf32>
    %c0_6 = arith.constant 0 : index
    %c8 = arith.constant 8 : index
    %c0_7 = arith.constant 0 : index
    %5 = vector.load %arg3[%c0_6, %c8, %c0_7] : memref<3x128x128xf32, #tpu.memory_space<vmem>>, vector<1x8x128xf32>
    %6 = vector.shape_cast %5 : vector<1x8x128xf32> to vector<8x128xf32>
    %cst_8 = arith.constant dense<0.000000e+00> : vector<8x128xf32>
    %7 = tpu.matmul %4, %6, %cst_8 {dimension_numbers = #tpu.dot_dimension_numbers<[1], [0], [0], [1], [0, 0, 1, 1], [], []>} : vector<8x8xf32>, vector<8x128xf32>, vector<8x128xf32> -> vector<8x128xf32>
    %8 = arith.addf %3, %7 : vector<8x128xf32>
    %c0_9 = arith.constant 0 : index
    %c0_10 = arith.constant 0 : index
    %9 = vector.load %arg4[%c0_9, %c0_10] : memref<3x128xf32, #tpu.memory_space<vmem>>, vector<1x128xf32>
    %10 = vector.broadcast %9 : vector<1x128xf32> to vector<8x128xf32>
    %11 = arith.addf %8, %10 : vector<8x128xf32>
    %cst_11 = arith.constant 0.000000e+00 : f32
    %12 = vector.broadcast %cst_11 : f32 to vector<8x128xf32>
    %13 = arith.maximumf %11, %12 : vector<8x128xf32>
    %c1 = arith.constant 1 : index
    %c0_12 = arith.constant 0 : index
    %c0_13 = arith.constant 0 : index
    %14 = vector.load %arg3[%c1, %c0_12, %c0_13] : memref<3x128x128xf32, #tpu.memory_space<vmem>>, vector<1x128x128xf32>
    %15 = vector.shape_cast %14 : vector<1x128x128xf32> to vector<128x128xf32>
    %cst_14 = arith.constant dense<0.000000e+00> : vector<8x128xf32>
    %16 = tpu.matmul %13, %15, %cst_14 {dimension_numbers = #tpu.dot_dimension_numbers<[1], [0], [0], [1], [0, 0, 1, 1], [], []>} : vector<8x128xf32>, vector<128x128xf32>, vector<8x128xf32> -> vector<8x128xf32>
    %c1_15 = arith.constant 1 : index
    %c0_16 = arith.constant 0 : index
    %17 = vector.load %arg4[%c1_15, %c0_16] : memref<3x128xf32, #tpu.memory_space<vmem>>, vector<1x128xf32>
    %18 = vector.broadcast %17 : vector<1x128xf32> to vector<8x128xf32>
    %19 = arith.addf %16, %18 : vector<8x128xf32>
    %cst_17 = arith.constant 0.000000e+00 : f32
    %20 = vector.broadcast %cst_17 : f32 to vector<8x128xf32>
    %21 = arith.maximumf %19, %20 : vector<8x128xf32>
    %c2 = arith.constant 2 : index
    %c0_18 = arith.constant 0 : index
    %c0_19 = arith.constant 0 : index
    %22 = vector.load %arg3[%c2, %c0_18, %c0_19] : memref<3x128x128xf32, #tpu.memory_space<vmem>>, vector<1x128x128xf32>
    %23 = vector.shape_cast %22 : vector<1x128x128xf32> to vector<128x128xf32>
    %cst_20 = arith.constant dense<0.000000e+00> : vector<8x128xf32>
    %24 = tpu.matmul %21, %23, %cst_20 {dimension_numbers = #tpu.dot_dimension_numbers<[1], [0], [0], [1], [0, 0, 1, 1], [], []>} : vector<8x128xf32>, vector<128x128xf32>, vector<8x128xf32> -> vector<8x128xf32>
    %c2_21 = arith.constant 2 : index
    %c0_22 = arith.constant 0 : index
    %25 = vector.load %arg4[%c2_21, %c0_22] : memref<3x128xf32, #tpu.memory_space<vmem>>, vector<1x128xf32>
    %26 = vector.broadcast %25 : vector<1x128xf32> to vector<8x128xf32>
    %27 = arith.addf %24, %26 : vector<8x128xf32>
    %28 = vector.extract_strided_slice %27 {offsets = [0, 0], sizes = [8, 1], strides = [1, 1]} : vector<8x128xf32> to vector<8x1xf32>
    %c0_23 = arith.constant 0 : index
    %c0_24 = arith.constant 0 : index
    %29 = vector.load %arg5[%c0_23, %c0_24] : memref<8x1xf32, #tpu.memory_space<vmem>>, vector<8x1xf32>
    tpu.vector_store %arg5[%c0_23, %c0_24], %28 {strides = array<i32>} : memref<8x1xf32, #tpu.memory_space<vmem>>, vector<8x1xf32>,
    return
  }
  func.func @transform_0(%arg0: i32) -> (i32, i32) {
    %c0_i32 = arith.constant 0 : i32
    %c0_i32_0 = arith.constant 0 : i32
    return %arg0, %c0_i32 : i32, i32
  }
  func.func @transform_1(%arg0: i32) -> (i32, i32) {
    %c0_i32 = arith.constant 0 : i32
    %c0_i32_0 = arith.constant 0 : i32
    return %arg0, %c0_i32 : i32, i32
  }
  func.func @transform_2(%arg0: i32) -> (i32, i32, i32) {
    %c0_i32 = arith.constant 0 : i32
    %c0_i32_0 = arith.constant 0 : i32
    %c0_i32_1 = arith.constant 0 : i32
    %c0_i32_2 = arith.constant 0 : i32
    return %c0_i32, %c0_i32_0, %c0_i32_1 : i32, i32, i32
  }
  func.func @transform_3(%arg0: i32) -> (i32, i32) {
    %c0_i32 = arith.constant 0 : i32
    %c0_i32_0 = arith.constant 0 : i32
    %c0_i32_1 = arith.constant 0 : i32
    return %c0_i32, %c0_i32_0 : i32, i32
  }
  func.func @transform_4(%arg0: i32) -> (i32, i32) {
    %c0_i32 = arith.constant 0 : i32
    %c0_i32_0 = arith.constant 0 : i32
    return %arg0, %c0_i32 : i32, i32
  }
}

</mosaic_0001>

<bundles_post_ra>
// kernel: tpu_custom_call.1
= control target key start
LH: loop header
LB: loop body
LE: loop exit
PB: predicated region body
PF: predicated region fallthrough
CT: control target
= control target key end

     0   :  { %9 = vsyncpa [#allocation3], 0  ;;  %s376_s0 = inlined_call_operand.hbm [shape: f32[8,8], index: 0, kind: input, shape index: {}]   ;;  %s377_s1 = inlined_call_operand.hbm [shape: f32[8,8], index: 1, kind: input, shape index: {}]   ;;  %s378_s2 = inlined_call_operand.hbm [shape: f32[3,128,128], index: 2, kind: input, shape index: {}]   ;;  %s379_s3 = inlined_call_operand.hbm [shape: f32[3,128], index: 3, kind: input, shape index: {}]   ;;  %s380_s4 = inlined_call_operand.vmem [shape: f32[8,1], index: 4, kind: output, shape index: {}]  }
   0x1   :  { %10 = vsyncpa [#allocation5], 0  ;;  %s28_s17 = sshll.u32 %s377_s1, 4  ;;  %s29_s17 = int_to_ptr.hbm [resolvable:$true] %s28_s17 }
   0x2   :  { %11 = vsyncpa [#allocation8], 0  ;;  %s330_s18 = smov [#allocation4]   ;;  %s17_s22 = sshll.u32 %s376_s0, 4  ;;  %s18_s22 = int_to_ptr.hbm [resolvable:$true] %s17_s22 }
   0x3   :  { %s30_s19 = sshll.u32 %s330_s18, 4  ;;  %s331_s23 = smov [#allocation2]   ;;  %s31_s19 = int_to_ptr.vmem [resolvable:$true] %s30_s19 }
   0x4   :  { %33 = dma.hbm_to_vmem [thread:$0]  %s29_s17, 128, %s31_s19, [#allocation5]  }
   0x5   :  { %s19_s24 = sshll.u32 %s331_s23, 4  ;;  %s38_s27 = sshll.u32 %s378_s2, 4  ;;  %s20_s24 = int_to_ptr.vmem [resolvable:$true] %s19_s24  ;;  %s39_s27 = int_to_ptr.hbm [resolvable:$true] %s38_s27 }
   0x6   :  { %22 = dma.hbm_to_vmem [thread:$0]  %s18_s22, 128, %s20_s24, [#allocation3]  }
   0x7   :  { %s332_s1 = smov [#allocation6]   ;;  %s52_s5 = sshll.u32 %s379_s3, 4  ;;  %s53_s5 = int_to_ptr.hbm [resolvable:$true] %s52_s5 }
   0x8   :  { %s40_s28 = sshll.u32 %s332_s1, 4  ;;  %s333_s6 = smov 128   ;;  %s41_s28 = int_to_ptr.vmem [resolvable:$true] %s40_s28 }
   0x9   :  { %s334_s0 = smov 8   ;;  %s335_s7 = smov [#allocation7]  }
   0xa   :  { %46 = dma.hbm_to_vmem [thread:$0]  %s39_s27, 6144, %s41_s28, [#allocation5], %s333_s6, %s333_s6, %s334_s0  }
   0xb   :  { %s54_s8 = sshll.u32 %s335_s7, 4  ;;  %s55_s8 = int_to_ptr.vmem [resolvable:$true] %s54_s8 }
   0xc   :  { %57 = dma.hbm_to_vmem [thread:$0]  %s53_s5, 64, %s55_s8, [#allocation8]  }
   0xd   :  { %324 = dma.done.wait [#allocation3], 128  }
   0xe   :  { %325 = vsyncadd [#allocation3], 4294967168 }
   0xf   :  { %326 = dma.done.wait [#allocation5], 6272  }
  0x10   :  { %327 = vsyncadd [#allocation5], 4294961024 }
  0x11   :  { %328 = dma.done.wait [#allocation8], 64  }
  0x12   :  { %329 = vsyncadd [#allocation8], 4294967232  ;;  %vm78_vm0 = vcmask 64512   ;;  %v77_v0 = vld [vmem:[#allocation6 + $0x8] sm:$0xff]  ;;  %v75_v1 = vld [vmem:[#allocation6] sm:$0xff]  ;;  %vm208_vm1 = vcmask 7168  }
  0x13   :  { %v76_v2 = vld [vmem:[#allocation4] sm:$0xff]  ;;  %97 = vmatpush.msra.mxu0 %v77_v0  ;;  %120 = vmatpush.msra.mxu1 %v75_v1  ;;  %v74_v3 = vld [vmem:[#allocation2] sm:$0xff]  ;;  %v143_v6 = vld [vmem:[#allocation6 + $0xe8] sm:$0xff] }
  0x14   :  { %v145_v4 = vld [vmem:[#allocation6 + $0xf8] sm:$0xff]  ;;  %217 = vmatmul.msk.f32.vlgmr.msra.gmra.mxu0 %vm78_vm0, %v76_v2  ;;  %218 = vmatmul.msk.f32.vlgmr.msra.gmra.mxu1 %vm78_vm0, %v74_v3  ;;  %v144_v5 = vld [vmem:[#allocation6 + $0xf0] sm:$0xff]  ;;  %v142_v7 = vld [vmem:[#allocation6 + $0xe0] sm:$0xff] }
  0x15   :  { %148 = vmatpush.msra.mxu2 %v145_v4  ;;  %v141_v8 = vld [vmem:[#allocation6 + $0xd8] sm:$0xff]  ;;  %v140_v9 = vld [vmem:[#allocation6 + $0xd0] sm:$0xff]  ;;  %v139_v10 = vld [vmem:[#allocation6 + $0xc8] sm:$0xff] }
  0x16   :  { %v138_v11 = vld [vmem:[#allocation6 + $0xc0] sm:$0xff]  ;;  %v137_v12 = vld [vmem:[#allocation6 + $0xb8] sm:$0xff]  ;;  %v136_v13 = vld [vmem:[#allocation6 + $0xb0] sm:$0xff] }
  0x17   :  { %149 = vmatpush.msra.mxu2 %v144_v5  ;;  %v135_v14 = vld [vmem:[#allocation6 + $0xa8] sm:$0xff]  ;;  %v134_v15 = vld [vmem:[#allocation6 + $0xa0] sm:$0xff]  ;;  %v133_v16 = vld [vmem:[#allocation6 + $0x98] sm:$0xff] }
  0x18   :  { %v132_v17 = vld [vmem:[#allocation6 + $0x90] sm:$0xff]  ;;  %v131_v18 = vld [vmem:[#allocation6 + $0x88] sm:$0xff]  ;;  %v130_v19 = vld [vmem:[#allocation6 + $0x80] sm:$0xff] }
  0x19   :  { %150 = vmatpush.msra.mxu2 %v143_v6  ;;  %v185_v20 = vld [vmem:[#allocation6 + $0x178] sm:$0xff]  ;;  %v184_v21 = vld [vmem:[#allocation6 + $0x170] sm:$0xff]  ;;  %v183_v22 = vld [vmem:[#allocation6 + $0x168] sm:$0xff] }
  0x1a   :  { %188 = vmatpush.msra.mxu3 %v185_v20  ;;  %v182_v23 = vld [vmem:[#allocation6 + $0x160] sm:$0xff]  ;;  %v181_v24 = vld [vmem:[#allocation6 + $0x158] sm:$0xff]  ;;  %v180_v25 = vld [vmem:[#allocation6 + $0x150] sm:$0xff] }
  0x1b   :  { %151 = vmatpush.msra.mxu2 %v142_v7  ;;  %v179_v26 = vld [vmem:[#allocation6 + $0x148] sm:$0xff]  ;;  %v178_v27 = vld [vmem:[#allocation6 + $0x140] sm:$0xff]  ;;  %v177_v28 = vld [vmem:[#allocation6 + $0x138] sm:$0xff] }
  0x1c   :  { %189 = vmatpush.msra.mxu3 %v184_v21  ;;  %v176_v29 = vld [vmem:[#allocation6 + $0x130] sm:$0xff]  ;;  %v175_v30 = vld [vmem:[#allocation6 + $0x128] sm:$0xff]  ;;  %v174_v31 = vld [vmem:[#allocation6 + $0x120] sm:$0xff] }
  0x1d   :  { %152 = vmatpush.msra.mxu2 %v141_v8  ;;  %v173_v32 = vld [vmem:[#allocation6 + $0x118] sm:$0xff]  ;;  %v225_v33 = vld [vmem:[#allocation7] ss:$0 sm:$0xff]  ;;  %v172_v39 = vld [vmem:[#allocation6 + $0x110] sm:$0xff] }
  0x1e   :  { %190 = vmatpush.msra.mxu3 %v183_v22  ;;  %v171_v40 = vld [vmem:[#allocation6 + $0x108] sm:$0xff]  ;;  %v170_v41 = vld [vmem:[#allocation6 + $0x100] sm:$0xff] }
  0x1f   :  { %153 = vmatpush.msra.mxu2 %v140_v9  ;;  %v226_v42 = vld [vmem:[#allocation7 + $0x1] ss:$0 sm:$0xff]  ;;  %v227_v46 = vld [vmem:[#allocation7 + $0x2] ss:$0 sm:$0xff] }
  0x20   :  { %191 = vmatpush.msra.mxu3 %v182_v23 }
  0x21   :  { %154 = vmatpush.msra.mxu2 %v139_v10 }
  0x22   :  { %192 = vmatpush.msra.mxu3 %v181_v24 }
  0x23   :  { %155 = vmatpush.msra.mxu2 %v138_v11 }
  0x24   :  { %193 = vmatpush.msra.mxu3 %v180_v25 }
  0x25   :  { %156 = vmatpush.msra.mxu2 %v137_v12 }
  0x26   :  { %194 = vmatpush.msra.mxu3 %v179_v26 }
  0x27   :  { %157 = vmatpush.msra.mxu2 %v136_v13 }
  0x28   :  { %195 = vmatpush.msra.mxu3 %v178_v27 }
  0x29   :  { %158 = vmatpush.msra.mxu2 %v135_v14 }
  0x2a   :  { %196 = vmatpush.msra.mxu3 %v177_v28 }
  0x2b   :  { %159 = vmatpush.msra.mxu2 %v134_v15 }
  0x2c   :  { %197 = vmatpush.msra.mxu3 %v176_v29 }
  0x2d   :  { %160 = vmatpush.msra.mxu2 %v133_v16 }
  0x2e   :  { %198 = vmatpush.msra.mxu3 %v175_v30 }
  0x2f   :  { %161 = vmatpush.msra.mxu2 %v132_v17 }
  0x30   :  { %199 = vmatpush.msra.mxu3 %v174_v31 }
  0x31   :  { %162 = vmatpush.msra.mxu2 %v131_v18 }
  0x32   :  { %200 = vmatpush.msra.mxu3 %v173_v32 }
  0x33   :  { %163 = vmatpush.msra.mxu2 %v130_v19 }
  0x34   :  { %201 = vmatpush.msra.mxu3 %v172_v39 }
  0x36   :  { %202 = vmatpush.msra.mxu3 %v171_v40 }
  0x38   :  { %203 = vmatpush.msra.mxu3 %v170_v41 }
  0x91   :  { %v99_v34 = vpop.f32.mrf.mxu0  ;;  %v122_v35 = vpop.f32.mrf.mxu1 }
  0x92   :  { %v123_v36 = vadd.f32 %v122_v35, %v99_v34 }
  0x94   :  { %v127_v37 = vadd.f32 %v225_v33, %v123_v36 }
  0x96   :  { %v128_v38 = vmax.f32 %v127_v37, 0.0 }
  0x98   :  { %164 = vmatmul.f32.vlgmr.msra.gmra.mxu2 %v128_v38 }
 0x11b   :  { %v165_v43 = vpop.f32.mrf.mxu2 }
 0x11c   :  { %v166_v44 = vadd.f32 %v226_v42, %v165_v43 }
 0x11e   :  { %v168_v45 = vmax.f32 %v166_v44, 0.0 }
 0x120   :  { %204 = vmatmul.f32.vlgmr.msra.gmra.mxu3 %v168_v45 }
 0x1a3   :  { %v205_v47 = vpop.f32.mrf.mxu3 }
 0x1a4   :  { %v206_v48 = vadd.f32 %v227_v46, %v205_v47 }
 0x1a6   :  { %209 = vst.msk [vmem:[%s380_s4] sm:$0xff] %vm208_vm1, %v206_v48 }
 0x1a7   :  { %214 = vsyncpa [#allocation3], 1 }
 0x1a8   :  { %215 = vsyncpa [#allocation5], 1 }
 0x1a9   :  { %216 = vsyncpa [#allocation8], 1 }

</bundles_post_ra>
